<compile_context>
chip_gen: v6e
topology: v6e:2x2x1
jax: 0.10.0
libtpu: 0.0.40
codegen_flags: <defaults>
</compile_context>

<pallas_src>
import jax
import jax.numpy as jnp
from jax import lax
from jax.experimental import pallas as pl
from jax.experimental.pallas import tpu as pltpu


# ---------------------------------------------------------------------------
# helpers
# ---------------------------------------------------------------------------
def _pick_tile(extent, preferred):
    """Largest tile <= preferred that divides `extent` and is a multiple of 8,
    falling back to the full extent (always correct)."""
    if extent <= preferred:
        return extent
    for t in range(preferred, 7, -8):
        if extent % t == 0:
            return t
    return extent


# ---------------------------------------------------------------------------
# Kernel 1: batched linear projection  y = x @ W + b   (bf16 MXU, f32 accum)
# ---------------------------------------------------------------------------
def _linear_kernel(x_ref, w_ref, b_ref, o_ref):
    x = x_ref[...].astype(jnp.bfloat16)                       # (tr, Din) bf16
    acc = jnp.dot(x, w_ref[...], preferred_element_type=jnp.float32)
    o_ref[...] = (acc + b_ref[...]).astype(o_ref.dtype)       # bias in f32


def _linear(x, w_bf16, b_f32, *, row_tile=512):
    """x: (R, Din) f32; w_bf16: (Din, Dout) bf16; b_f32: (1, Dout) f32.
    Returns (R, Dout) bf16."""
    R, Din = x.shape
    Dout = w_bf16.shape[1]
    tr = _pick_tile(R, row_tile)
    return pl.pallas_call(
        _linear_kernel,
        out_shape=jax.ShapeDtypeStruct((R, Dout), jnp.bfloat16),
        grid_spec=pltpu.PrefetchScalarGridSpec(
            num_scalar_prefetch=0,
            grid=(R // tr,),
            in_specs=[
                pl.BlockSpec((tr, Din), lambda i: (i, 0)),     # activations
                pl.BlockSpec((Din, Dout), lambda i: (0, 0)),   # weight (const)
                pl.BlockSpec((1, Dout), lambda i: (0, 0)),     # bias   (const)
            ],
            out_specs=pl.BlockSpec((tr, Dout), lambda i: (i, 0)),
        ),
        compiler_params=pltpu.CompilerParams(
            dimension_semantics=("parallel",)),
    )(x, w_bf16, b_f32)


# ---------------------------------------------------------------------------
# Kernel 2: flash-style attention over (B, Sq-tiles, Sk-tiles)
# ---------------------------------------------------------------------------
def _flash_kernel(q_ref, k_ref, v_ref, o_ref, m_sc, l_sc, acc_sc):
    kv = pl.program_id(2)

    @pl.when(kv == 0)
    def _():
        m_sc[...] = jnp.full_like(m_sc, -jnp.inf)
        l_sc[...] = jnp.zeros_like(l_sc)
        acc_sc[...] = jnp.zeros_like(acc_sc)

    q = q_ref[0]                                   # (tq, D)  bf16 (pre-scaled)
    k = k_ref[0]                                   # (tk, D)  bf16
    v = v_ref[0]                                   # (tk, Dk) bf16

    # Q K^T without transposing K: contract last dims on the MXU, f32 accum.
    s = lax.dot_general(q, k, dimension_numbers=(((1,), (1,)), ((), ())),
                        preferred_element_type=jnp.float32)    # (tq, tk) f32

    m_prev = m_sc[...]
    m_new = jnp.maximum(m_prev, jnp.max(s, axis=-1, keepdims=True))
    alpha = jnp.exp(m_prev - m_new)                            # f32 EUP
    p = jnp.exp(s - m_new)                                     # f32 EUP

    l_sc[...] = alpha * l_sc[...] + jnp.sum(p, axis=-1, keepdims=True)
    acc_sc[...] = alpha * acc_sc[...] + jnp.dot(
        p.astype(v.dtype), v, preferred_element_type=jnp.float32)
    m_sc[...] = m_new

    @pl.when(kv == pl.num_programs(2) - 1)
    def _():
        inv_l = pl.reciprocal(l_sc[...], approx=True)          # EUP, ~free
        # NOTE: output lane dim is the head dim (< 128 here) -> masked stores;
        # for production head dims fold heads/batch into the last dim instead.
        o_ref[0] = (acc_sc[...] * inv_l).astype(o_ref.dtype)


def _flash_attention(q, k, v, out_dtype, *, q_tile=128, kv_tile=128):
    """q: (B, Sq, D) bf16 (scale already folded in); k: (B, Sk, D) bf16;
    v: (B, Sk, Dk) bf16.  Returns (B, Sq, Dk) in out_dtype."""
    B, Sq, D = q.shape
    _, Sk, Dk = v.shape
    tq = _pick_tile(Sq, q_tile)
    tk = _pick_tile(Sk, kv_tile)

    return pl.pallas_call(
        _flash_kernel,
        out_shape=jax.ShapeDtypeStruct((B, Sq, Dk), out_dtype),
        grid_spec=pltpu.PrefetchScalarGridSpec(
            num_scalar_prefetch=0,
            grid=(B, Sq // tq, Sk // tk),
            in_specs=[
                pl.BlockSpec((1, tq, D), lambda b, i, j: (b, i, 0)),
                pl.BlockSpec((1, tk, D), lambda b, i, j: (b, j, 0)),
                pl.BlockSpec((1, tk, Dk), lambda b, i, j: (b, j, 0)),
            ],
            out_specs=pl.BlockSpec((1, tq, Dk), lambda b, i, j: (b, i, 0)),
            scratch_shapes=[
                pltpu.VMEM((tq, 1), jnp.float32),   # running max  m
                pltpu.VMEM((tq, 1), jnp.float32),   # running sum  l
                pltpu.VMEM((tq, Dk), jnp.float32),  # accumulator
            ],
        ),
        compiler_params=pltpu.CompilerParams(
            dimension_semantics=("parallel", "parallel", "arbitrary")),
    )(q, k, v)


# ---------------------------------------------------------------------------
# Module wrapper
# ---------------------------------------------------------------------------
def attention_head(query, key, value, params):
    """query: (B, S_q, D_in); key/value: (B, S_k, D_in). Returns (B, S_q, dim_k)."""
    wq, bq, wk, bk, wv, bv = (params["wq"], params["bq"], params["wk"],
                              params["bk"], params["wv"], params["bv"])
    B, Sq, Din = query.shape
    _, Sk, _ = key.shape
    Dq = wq.shape[1]
    Dk = wk.shape[1]

    # Fold the 1/sqrt(dim_q) softmax scale into the Q projection (free).
    scale = 1.0 / (Dq ** 0.5)
    wq_s = (wq * scale).astype(jnp.bfloat16)
    bq_s = (bq * scale).reshape(1, Dq).astype(jnp.float32)
    wk_b = wk.astype(jnp.bfloat16)
    bk_b = bk.reshape(1, Dk).astype(jnp.float32)
    wv_b = wv.astype(jnp.bfloat16)
    bv_b = bv.reshape(1, Dk).astype(jnp.float32)

    # One big row-batched matmul per projection (K/V projected exactly once).
    q = _linear(query.reshape(B * Sq, Din), wq_s, bq_s).reshape(B, Sq, Dq)
    k = _linear(key.reshape(B * Sk, Din), wk_b, bk_b).reshape(B, Sk, Dk)
    v = _linear(value.reshape(B * Sk, Din), wv_b, bv_b).reshape(B, Sk, Dk)

    return _flash_attention(q, k, v, out_dtype=query.dtype)


def init_params(key, dim_in, dim_q, dim_k):
    """Deterministic init mirroring nn.Linear's U(-1/sqrt(fan_in), 1/sqrt(fan_in)).
    Weights are stored already transposed: (dim_in, dim_out)."""
    ks = jax.random.split(key, 6)
    bound = 1.0 / (dim_in ** 0.5)
    u = lambda k, shp: jax.random.uniform(k, shp, jnp.float32, -bound, bound)
    return {
        "wq": u(ks[0], (dim_in, dim_q)), "bq": u(ks[1], (dim_q,)),
        "wk": u(ks[2], (dim_in, dim_k)), "bk": u(ks[3], (dim_k,)),
        "wv": u(ks[4], (dim_in, dim_k)), "bv": u(ks[5], (dim_k,)),
    }


def _reference(query, key, value, params):
    q = query @ params["wq"] + params["bq"]
    k = key @ params["wk"] + params["bk"]
    v = value @ params["wv"] + params["bv"]
    scores = jnp.einsum("bqd,bkd->bqk", q, k) / (q.shape[-1] ** 0.5)
    p = jax.nn.softmax(scores, axis=-1)
    return jnp.einsum("bqk,bkd->bqd", p, v)


if __name__ == "__main__":
    B, S, DIM_IN, DIM_Q, DIM_K = 2, 8, 32, 16, 16

    root = jax.random.PRNGKey(0)
    k_params, k_q, k_k, k_v = jax.random.split(root, 4)

    params = init_params(k_params, DIM_IN, DIM_Q, DIM_K)
    query = jax.random.normal(k_q, (B, S, DIM_IN), jnp.float32)
    key = jax.random.normal(k_k, (B, S, DIM_IN), jnp.float32)
    value = jax.random.normal(k_v, (B, S, DIM_IN), jnp.float32)

    out = attention_head(query, key, value, params)
    out = jax.block_until_ready(out)

    ref = _reference(query, key, value, params)
    assert out.shape == (B, S, DIM_K), out.shape
    # Tolerance loosened for bf16 MXU operands + approx reciprocal.
    err = float(jnp.max(jnp.abs(out - ref)))
    assert jnp.allclose(out, ref, atol=3e-2, rtol=3e-2), f"mismatch, max err {err}"

    print("KERNEL_OK")
</pallas_src>

<mosaic_0001>
module attributes {stable_mosaic.version = 11 : i64} {
  func.func @_linear_kernel(%arg0: i32, %arg1: memref<16x32xf32, #tpu.memory_space<vmem>>, %arg2: memref<32x16xbf16, #tpu.memory_space<vmem>>, %arg3: memref<1x16xf32, #tpu.memory_space<vmem>>, %arg4: memref<16x16xbf16, #tpu.memory_space<vmem>>) attributes {dimension_semantics = [#tpu.dimension_semantics<parallel>], iteration_bounds = array<i64: 1>, scalar_prefetch = 0 : i64, scratch_operands = 0 : i64, tpu.core_type = #tpu.core_type<tc>, window_params = [{transform_indices = @transform_0, window_bounds = array<i64: 16, 32>}, {pipeline_mode = #tpu.pipeline_mode<synchronous>, transform_indices = @transform_1, window_bounds = array<i64: 32, 16>}, {pipeline_mode = #tpu.pipeline_mode<synchronous>, transform_indices = @transform_2, window_bounds = array<i64: 1, 16>}, {transform_indices = @transform_3, window_bounds = array<i64: 16, 16>}]} {
    %c0 = arith.constant 0 : index
    %c0_0 = arith.constant 0 : index
    %0 = vector.load %arg1[%c0, %c0_0] : memref<16x32xf32, #tpu.memory_space<vmem>>, vector<16x32xf32>
    %1 = arith.truncf %0 : vector<16x32xf32> to vector<16x32xbf16>
    %c0_1 = arith.constant 0 : index
    %c0_2 = arith.constant 0 : index
    %2 = vector.load %arg2[%c0_1, %c0_2] : memref<32x16xbf16, #tpu.memory_space<vmem>>, vector<32x16xbf16>
    %cst = arith.constant dense<0.000000e+00> : vector<16x16xf32>
    %3 = tpu.matmul %1, %2, %cst {dimension_numbers = #tpu.dot_dimension_numbers<[1], [0], [0], [1], [0, 0, 1, 1], [], []>} : vector<16x32xbf16>, vector<32x16xbf16>, vector<16x16xf32> -> vector<16x16xf32>
    %c0_3 = arith.constant 0 : index
    %c0_4 = arith.constant 0 : index
    %4 = vector.load %arg3[%c0_3, %c0_4] : memref<1x16xf32, #tpu.memory_space<vmem>>, vector<1x16xf32>
    %5 = vector.broadcast %4 : vector<1x16xf32> to vector<16x16xf32>
    %6 = arith.addf %3, %5 : vector<16x16xf32>
    %7 = arith.truncf %6 : vector<16x16xf32> to vector<16x16xbf16>
    %c0_5 = arith.constant 0 : index
    %c0_6 = arith.constant 0 : index
    %8 = vector.load %arg4[%c0_5, %c0_6] : memref<16x16xbf16, #tpu.memory_space<vmem>>, vector<16x16xbf16>
    tpu.vector_store %arg4[%c0_5, %c0_6], %7 {strides = array<i32>} : memref<16x16xbf16, #tpu.memory_space<vmem>>, vector<16x16xbf16>,
    return
  }
  func.func @transform_0(%arg0: i32) -> (i32, i32) {
    %c0_i32 = arith.constant 0 : i32
    %c0_i32_0 = arith.constant 0 : i32
    return %arg0, %c0_i32 : i32, i32
  }
  func.func @transform_1(%arg0: i32) -> (i32, i32) {
    %c0_i32 = arith.constant 0 : i32
    %c0_i32_0 = arith.constant 0 : i32
    %c0_i32_1 = arith.constant 0 : i32
    return %c0_i32, %c0_i32_0 : i32, i32
  }
  func.func @transform_2(%arg0: i32) -> (i32, i32) {
    %c0_i32 = arith.constant 0 : i32
    %c0_i32_0 = arith.constant 0 : i32
    %c0_i32_1 = arith.constant 0 : i32
    return %c0_i32, %c0_i32_0 : i32, i32
  }
  func.func @transform_3(%arg0: i32) -> (i32, i32) {
    %c0_i32 = arith.constant 0 : i32
    %c0_i32_0 = arith.constant 0 : i32
    return %arg0, %c0_i32 : i32, i32
  }
}

</mosaic_0001>

<bundles_post_ra>
// kernel: tpu_custom_call.1
= control target key start
LH: loop header
LB: loop body
LE: loop exit
PB: predicated region body
PF: predicated region fallthrough
CT: control target
= control target key end

     0   :  { %v162_v1 = vmov 0.0   ;;  %vm163_vm0 = vmmov 0   ;;  %s205_s0 = inlined_call_operand.vmem [shape: f32[16,32], index: 0, kind: input, shape index: {}]   ;;  %s206_s1 = inlined_call_operand.vmem [shape: bf16[32,16], index: 1, kind: input, shape index: {}]   ;;  %s207_s2 = inlined_call_operand.vmem [shape: f32[1,16], index: 2, kind: input, shape index: {}]   ;;  %s208_s3 = inlined_call_operand.hbm [shape: bf16[16,16], index: 3, kind: output, shape index: {}]  }
   0x1   :  { %v138_v0 = vld [vmem:[%s206_s1 + $0x8] sm:$0xff]   ;;  %125 = vmatprep.subr.bf16.mxu0 %v162_v1  ;;  %v139_v2 = vld [vmem:[%s206_s1] sm:$0xff]   ;;  %129 = vmatprep.mubr.msk.bf16.mxu0 %vm163_vm0, %v162_v1 }
   0x2   :  { %126 = vmatpush3.bf16.msra.mxu0 %v138_v0  ;;  %v16_v3 = vld [vmem:[%s205_s0] sm:$0xff]  ;;  %v17_v4 = vld [vmem:[%s205_s0 + $0x8] sm:$0xff] }
   0x3   :  { %127 = vmatprep.subr.bf16.mxu0 %v162_v1 }
   0x4   :  { %8 = vsyncpa [#allocation3], 0  ;;  %v18_v5 = vpack.c.bf16 %v17_v4, %v16_v3  ;;  %vm42_vm1 = vcmask 261120   ;;  %v114_v6 = vld [vmem:[%s207_s2] ss:$0 sm:$0xff]  ;;  %vm95_vm2 = vcmask 125952  }
   0x5   :  { %s164_s1 = smov [#allocation2]  }
   0x6   :  { %128 = vmatpush3.bf16.msra.mxu0 %v139_v2  ;;  %s103_s22 = sshll.u32 %s164_s1, 4  ;;  %s104_s22 = int_to_ptr.vmem [resolvable:$true] %s103_s22 }
   0x7   :  { %s140_s0 = scalar_lea.vmem %s104_s22, 128  ;;  %p145_p1 = scmp.lt.s32.totalorder %s104_s22, %s104_s22 }
   0x8   :  { %p141_p0 = scmp.ne.s32.totalorder %s104_s22, %s140_s0  ;;  %p146_p2 = scmp.lt.s32.totalorder %s140_s0, %s140_s0 }
   0x9   :  { %130 = vmatmul.mubr.msk.bf16.vlgmr.msra.gmra.mxu0 %vm42_vm1, %v18_v5 }
   0xa   :  { %p147_p3 = por %p146_p2, %p145_p1 }
   0xc   :  { %p148_p4 = pnand %p147_p3, %p141_p0 }
  0xc9   :  { %v80_v7 = vpop.f32.mrf.mxu0 }
  0xca   :  { %v81_v8 = vadd.f32 %v114_v6, %v80_v7 }
  0xcb   :  { %v131_v9 = vpop.f32.mrf.mxu0 }
  0xcc   :  { %v120_v10 = vpack.c.bf16 %v81_v8, %v81_v8 }
  0xcd   :  { %v83_v11 = vpop.f32.mrf.mxu0 }
  0xce   :  { %96 = vst.msk [vmem:[#allocation2] sm:$0xf] %vm95_vm2, %v120_v10  ;;  %v84_v12 = vadd.f32 %v114_v6, %v83_v11 }
  0xcf   :  { %v132_v13 = vpop.f32.mrf.mxu0 }
  0xd0   :  { %v121_v14 = vpack.c.bf16 %v84_v12, %v84_v12 }
  0xd2   :  { %97 = vst.msk [vmem:[#allocation2 + $0x4] sm:$0xf] %vm95_vm2, %v121_v14 }
  0xd3   :  { %151 = shalt.err (!%p148_p4)
}
  0xd4   :  { %s165_s2 = smov 64   ;;  %s166_s23 = smov 4  }
  0xd5   :  { %109 = dma.vmem_to_hbm [thread:$0]  %s104_s22, 128, %s208_s3, [#allocation3], %s165_s2, %s165_s2, %s166_s23  }
  0xd6   :  { %160 = dma.done.wait [#allocation3], 128  }
  0xd7   :  { %161 = vsyncadd [#allocation3], 4294967168 }
  0xd8   :  { %113 = vsyncpa [#allocation3], 1 }

</bundles_post_ra>
